<compile_context>
chip_gen: v7x
topology: tpu7x:2x2x1
jax: 0.10.0
libtpu: 0.0.40
codegen_flags: <defaults>
</compile_context>

<pallas_src>
import functools

import jax
import jax.numpy as jnp
from jax.experimental import pallas as pl
from jax.experimental.pallas import tpu as pltpu

_MIB = 1024 * 1024


def _tpu_info():
    try:
        return pltpu.get_tpu_info()
    except Exception:
        return None


def _vmem_capacity_bytes() -> int:
    info = _tpu_info()
    if info is not None:
        try:
            v = int(getattr(info, "vmem_capacity_bytes"))
            if v > 0:
                return v
        except (AttributeError, TypeError, ValueError):
            pass
    return 64 * _MIB  # conservative fallback (v7x per-TC VMEM)


def _cores_per_chip() -> int:
    info = _tpu_info()
    if info is None:
        return 1
    for name in ("num_tensorcores", "tensorcore_count", "num_cores",
                 "core_count", "cores_per_chip"):
        try:
            v = int(getattr(info, name))
            if v > 0:
                return v
        except (AttributeError, TypeError, ValueError):
            continue
    return 1


def _snake1d_kernel(x_ref, alpha_ref, o_ref, *, eps: float):
    # x_ref / o_ref : (tr, tt)  rows = flattened (batch, channel), lanes = time
    # alpha_ref     : (tr, 1)   raw per-row alpha (f32), lane-broadcast below
    a = alpha_ref[...]                                   # (tr, 1) f32
    inv = 1.0 / (a + jnp.float32(eps))                   # once per tile, hidden under DMA
    if x_ref.dtype == jnp.bfloat16:
        # bf16 VALU/EUP path (v6e/v7x): 2x elems per vreg for the sin polynomial.
        xb = x_ref[...]
        s = jnp.sin(a.astype(jnp.bfloat16) * xb)
        act = inv * (s * s).astype(jnp.float32)
        o_ref[...] = (xb.astype(jnp.float32) + act).astype(o_ref.dtype)
    else:
        x = x_ref[...].astype(jnp.float32)
        s = jnp.sin(a * x)
        o_ref[...] = (x + inv * (s * s)).astype(o_ref.dtype)


def snake1d(x, alpha, eps: float = 1e-8, *, row_tile: int = 256):
    """Snake1d activation. x: (B, C, T), alpha: (C,) -> (B, C, T)."""
    B, C, T = x.shape
    R = B * C
    itemsize = jnp.dtype(x.dtype).itemsize

    # Flatten (B, C) onto sublanes; time stays on the lane axis (lane-dense stores).
    x2 = x.reshape(R, T)
    # Per-row parameter column: channel alpha replicated over batch (f32, tiny).
    a_col = jnp.broadcast_to(alpha.astype(jnp.float32)[None, :], (B, C)).reshape(R, 1)

    # --- generation-aware VMEM budget / tile sizing --------------------------
    vmem_cap = _vmem_capacity_bytes()
    vmem_limit = min(vmem_cap * 3 // 4, 96 * _MIB)       # 96 MiB on v5e/v6e, 48 MiB on v7x

    # Sublane pack for this dtype (8 f32 / 16 bf16 / 32 int8-fp8). row_tile=256
    # is a multiple of 32, so every tiled row block stays pack-aligned.
    pack = max(8, 32 // itemsize)
    assert row_tile % pack == 0
    tr = R if R <= row_tile else row_tile

    # Lane tile: biggest multiple of 128 such that (x + out), double-buffered,
    # stays well inside the VMEM limit; use full T when it already fits.
    per_tile_budget = vmem_limit // 6                    # 4 pipeline buffers + slack
    lane_tile_max = (per_tile_budget // (tr * itemsize)) // 128 * 128
    lane_tile_max = max(512, min(8192, lane_tile_max))
    tt = T if T <= lane_tile_max else lane_tile_max

    grid = (pl.cdiv(R, tr), pl.cdiv(T, tt))              # ragged edges masked by Pallas

    # Megacore / v7x: split the row axis across TensorCores when available.
    cores = _cores_per_chip()
    row_sem = pltpu.CORE_PARALLEL if (cores > 1 and grid[0] >= cores) else pltpu.PARALLEL

    out2 = pl.pallas_call(
        functools.partial(_snake1d_kernel, eps=eps),
        out_shape=jax.ShapeDtypeStruct((R, T), x.dtype),
        grid_spec=pltpu.PrefetchScalarGridSpec(
            num_scalar_prefetch=0,
            grid=grid,
            in_specs=[
                pl.BlockSpec((tr, tt), lambda r, t: (r, t)),   # x tile
                pl.BlockSpec((tr, 1), lambda r, t: (r, 0)),    # alpha column (reused over t)
            ],
            out_specs=pl.BlockSpec((tr, tt), lambda r, t: (r, t)),
        ),
        compiler_params=pltpu.CompilerParams(
            dimension_semantics=(row_sem, pltpu.ARBITRARY),
            vmem_limit_bytes=vmem_limit,
        ),
    )(x2, a_col)

    return out2.reshape(B, C, T)


def snake1d_ref(x, alpha, eps: float = 1e-8):
    a = alpha[None, :, None].astype(jnp.float32)
    xf = x.astype(jnp.float32)
    return (xf + (1.0 / (a + eps)) * jnp.sin(a * xf) ** 2).astype(x.dtype)


if __name__ == "__main__":
    key = jax.random.PRNGKey(0)
    kx, ka = jax.random.split(key)

    # Small shapes consistent with the module: (batch, channels, time).
    B, C, T = 2, 4, 16
    x = jax.random.normal(kx, (B, C, T), dtype=jnp.float32)
    alpha = jax.random.normal(ka, (C,), dtype=jnp.float32)   # nn.Parameter(torch.randn(C))
    out = jax.block_until_ready(snake1d(x, alpha))
    ref = snake1d_ref(x, alpha)
    assert out.shape == (B, C, T)
    assert jnp.allclose(out, ref, atol=1e-5, rtol=1e-5), "mismatch vs reference (small)"

    # Ragged path: R = 300 rows (last row block masked) and T = 8325 lanes
    # (> lane tile on every generation, not a multiple of 128) -> exercises the
    # cdiv boundary blocks with no host-side pad/slice.
    B2, C2, T2 = 3, 100, 8325
    x_big = jax.random.normal(kx, (B2, C2, T2), dtype=jnp.float32)
    alpha_big = jax.random.normal(ka, (C2,), dtype=jnp.float32)
    out_big = jax.block_until_ready(snake1d(x_big, alpha_big))
    ref_big = snake1d_ref(x_big, alpha_big)
    assert jnp.allclose(out_big, ref_big, atol=1e-5, rtol=1e-5), "mismatch vs reference (ragged)"

    print("KERNEL_OK")
</pallas_src>

<mosaic_0001>
module attributes {stable_mosaic.version = 11 : i64} {
  func.func @_snake1d_kernel(%arg0: i32, %arg1: i32, %arg2: memref<8x16xf32, #tpu.memory_space<vmem>>, %arg3: memref<8x1xf32, #tpu.memory_space<vmem>>, %arg4: memref<8x16xf32, #tpu.memory_space<vmem>>) attributes {dimension_semantics = [#tpu.dimension_semantics<parallel>, #tpu.dimension_semantics<arbitrary>], iteration_bounds = array<i64: 1, 1>, scalar_prefetch = 0 : i64, scratch_operands = 0 : i64, tpu.core_type = #tpu.core_type<tc>, window_params = [{transform_indices = @transform_0, window_bounds = array<i64: 8, 16>}, {transform_indices = @transform_1, window_bounds = array<i64: 8, 1>}, {transform_indices = @transform_2, window_bounds = array<i64: 8, 16>}]} {
    %c0 = arith.constant 0 : index
    %c0_0 = arith.constant 0 : index
    %0 = vector.load %arg3[%c0, %c0_0] : memref<8x1xf32, #tpu.memory_space<vmem>>, vector<8x1xf32>
    %cst = arith.constant 9.99999993E-9 : f32
    %1 = vector.broadcast %cst : f32 to vector<8x1xf32>
    %2 = arith.addf %0, %1 : vector<8x1xf32>
    %cst_1 = arith.constant 1.000000e+00 : f32
    %3 = vector.broadcast %cst_1 : f32 to vector<8x1xf32>
    %4 = arith.divf %3, %2 : vector<8x1xf32>
    %c0_2 = arith.constant 0 : index
    %c0_3 = arith.constant 0 : index
    %5 = vector.load %arg2[%c0_2, %c0_3] : memref<8x16xf32, #tpu.memory_space<vmem>>, vector<8x16xf32>
    %6 = vector.broadcast %0 : vector<8x1xf32> to vector<8x16xf32>
    %7 = arith.mulf %6, %5 : vector<8x16xf32>
    %8 = math.sin %7 : vector<8x16xf32>
    %9 = arith.mulf %8, %8 : vector<8x16xf32>
    %10 = vector.broadcast %4 : vector<8x1xf32> to vector<8x16xf32>
    %11 = arith.mulf %10, %9 : vector<8x16xf32>
    %12 = arith.addf %5, %11 : vector<8x16xf32>
    %c0_4 = arith.constant 0 : index
    %c0_5 = arith.constant 0 : index
    %13 = vector.load %arg4[%c0_4, %c0_5] : memref<8x16xf32, #tpu.memory_space<vmem>>, vector<8x16xf32>
    tpu.vector_store %arg4[%c0_4, %c0_5], %12 {strides = array<i32>} : memref<8x16xf32, #tpu.memory_space<vmem>>, vector<8x16xf32>,
    return
  }
  func.func @transform_0(%arg0: i32, %arg1: i32) -> (i32, i32) {
    %c0_i32 = arith.constant 0 : i32
    return %arg0, %arg1 : i32, i32
  }
  func.func @transform_1(%arg0: i32, %arg1: i32) -> (i32, i32) {
    %c0_i32 = arith.constant 0 : i32
    %c0_i32_0 = arith.constant 0 : i32
    return %arg0, %c0_i32 : i32, i32
  }
  func.func @transform_2(%arg0: i32, %arg1: i32) -> (i32, i32) {
    %c0_i32 = arith.constant 0 : i32
    return %arg0, %arg1 : i32, i32
  }
}

</mosaic_0001>

<bundles_post_ra>
// kernel: tpu_custom_call.1
= control target key start
LH: loop header
LB: loop body
LE: loop exit
PB: predicated region body
PF: predicated region fallthrough
CT: control target
= control target key end

     0   :  { %v198_v1 = vmov 0   ;;  %s264_s0 = inlined_call_operand.vmem [shape: f32[8,16], index: 0, kind: input, shape index: {}]   ;;  %s265_s1 = inlined_call_operand.vmem [shape: f32[8,1], index: 1, kind: input, shape index: {}]   ;;  %s266_s2 = inlined_call_operand.hbm [shape: f32[8,16], index: 2, kind: output, shape index: {}]  }
   0x1   :  { %v12_v0 = vld [vmem:[%s265_s1] sm:$0xff]  ;;  %167 = vset.pattern.permute.xlu0 %v198_v1 }
   0x2   :  { %v13_v2 = vadd.f32 1e-08, %v12_v0  ;;  %19 = vperm.xlu0 %167, %v12_v0  }
   0x4   :  { %168 = vrcp.f32 %v13_v2 }
   0x5   :  { %7 = vsyncpa [#allocation3], 0  ;;  %v227_v4 = vld [vmem:[%s264_s0] sm:$0xff]  ;;  %v199_v17 = vmov 683565275   ;;  %s205_s0 = smov [#allocation2]  }
   0x6   :  { %v200_v19 = vmov 2475754826   ;;  %v201_v22 = vmov 2131351028   ;;  %v202_v25 = vmov 2102212464  }
   0x7   :  { %v203_v28 = vmov 920167782   ;;  %v204_v31 = vmov 1326507024   ;;  %s143_s1 = sshll.u32 %s205_s0, 4  ;;  %vm135_vm13 = vcmask 130048   ;;  %s144_s1 = int_to_ptr.vmem [resolvable:$true] %s143_s1 }
   0x8   :  { %s174_s13 = scalar_lea.vmem %s144_s1, 128  ;;  %p179_p1 = scmp.lt.s32.totalorder %s144_s1, %s144_s1 }
   0x9   :  { %p175_p0 = scmp.ne.s32.totalorder %s144_s1, %s174_s13  ;;  %p180_p2 = scmp.lt.s32.totalorder %s174_s13, %s174_s13 }
   0xb   :  { %p181_p3 = por %p180_p2, %p179_p1 }
   0xd   :  { %p182_p4 = pnand %p181_p3, %p175_p0 }
   0xe   :  { %v169_v3 = vpop.eup %168 }
   0xf   :  { %130 = vperm.xlu0 %167, %v169_v3  }
  0x81   :  { %v20_v5 = vpop.permute.xlu0 %19 }
  0x82   :  { %v230_v6 = vmul.f32 %v20_v5, %v227_v4 }
  0x84   :  { %v26_v7 = vand.u32 2139095040, %v230_v6  ;;  %v23_v11 = vand.u32 2147483647, %v230_v6  ;;  %vm25_vm7 = vcmp.lt.s32.totalorder %v230_v6, 0  ;;  %vm115_vm12 = vweird.f32 %v230_v6 }
  0x86   :  { %v27_v8 = vshrl.u32 %v26_v7, 23  ;;  %v30_v14 = vand.u32 8388607, %v23_v11  ;;  %vm24_vm8 = vcmp.le.f32.partialorder %v23_v11, 0.7853982 }
  0x88   :  { %v151_v9 = vadd.s32 4294967169, %v27_v8  ;;  %v31_v33 = vor.u32 8388608, %v30_v14 }
  0x8a   :  { %v33_v10 = vadd.s32 1, %v151_v9  ;;  %v71_v47 = vshll.u32 %v31_v33, 8 }
  0x8c   :  { %vm34_vm0 = vcmp.gt.s32.totalorder %v33_v10, 0 }
  0x8d   :  { %v35_v12 = vsel %vm34_vm0, %v33_v10, 0 }
  0x8e   :  { %v37_v13 = vand.u32 31, %v35_v12  ;;  %v36_v16 = vshrl.u32 %v35_v12, 5 }
  0x90   :  { %v38_v15 = vsub.s32 32, %v37_v13  ;;  %v40_v18 = vshll.u32 %v199_v17, %v37_v13  ;;  %v43_v20 = vshll.u32 %v200_v19, %v37_v13  ;;  %v46_v24 = vshll.u32 %v201_v22, %v37_v13 }
  0x91   :  { %v49_v27 = vshll.u32 %v202_v25, %v37_v13  ;;  %v52_v30 = vshll.u32 %v203_v28, %v37_v13  ;;  %vm55_vm1 = vcmp.lt.s32.totalorder %v36_v16, 1  ;;  %vm58_vm2 = vcmp.lt.s32.totalorder %v36_v16, 4 }
  0x92   :  { %v41_v21 = vshrl.u32 %v200_v19, %v38_v15  ;;  %v44_v23 = vshrl.u32 %v201_v22, %v38_v15  ;;  %v47_v26 = vshrl.u32 %v202_v25, %v38_v15  ;;  %v50_v29 = vshrl.u32 %v203_v28, %v38_v15 }
  0x93   :  { %v53_v32 = vshrl.u32 %v204_v31, %v38_v15  ;;  %v39_v42 = vshrl.u32 %v199_v17, %v38_v15  ;;  %vm57_vm3 = vcmp.lt.s32.totalorder %v36_v16, 3  ;;  %vm56_vm4 = vcmp.lt.s32.totalorder %v36_v16, 2 }
  0x94   :  { %v42_v34 = vor.u32 %v41_v21, %v40_v18  ;;  %v45_v35 = vor.u32 %v44_v23, %v43_v20  ;;  %v48_v36 = vor.u32 %v47_v26, %v46_v24  ;;  %v51_v37 = vor.u32 %v50_v29, %v49_v27 }
  0x95   :  { %v54_v38 = vor.u32 %v53_v32, %v52_v30 }
  0x96   :  { %v60_v39 = vsel %vm58_vm2, %v48_v36, 2102212464  ;;  %v63_v40 = vsel %vm55_vm1, %v42_v34, %v45_v35  ;;  %v67_v41 = vsel %vm55_vm1, %v45_v35, %v48_v36  ;;  %v64_v43 = vsel %vm58_vm2, %v51_v37, 920167782 }
  0x97   :  { %v68_v44 = vsel %vm58_vm2, %v54_v38, 1326507024  ;;  %v65_v45 = vsel %vm57_vm3, %v48_v36, %v64_v43  ;;  %v59_v48 = vsel %vm55_vm1, %v39_v42, %v42_v34  ;;  %v61_v49 = vsel %vm57_vm3, %v45_v35, %v60_v39 }
  0x98   :  { %v69_v46 = vsel %vm57_vm3, %v51_v37, %v68_v44  ;;  %v66_v50 = vsel %vm56_vm4, %v63_v40, %v65_v45  ;;  %v62_v56 = vsel %vm56_vm4, %v59_v48, %v61_v49  ;;  %v131_v37 = vpop.permute.xlu0 %130 }
  0x99   :  { %v70_v51 = vsel %vm56_vm4, %v67_v41, %v69_v46  ;;  %v239_v54 = vmul.u32.u64.low %v71_v47, %v66_v50  ;;  %v240_v55 = vmul.u32.u64.high %v71_v47, %v66_v50, %v239_v54  ;;  %v78_v58 = vmul.u32 %v71_v47, %v62_v56 }
  0x9a   :  { %v236_v52 = vmul.u32.u64.low %v71_v47, %v70_v51  ;;  %v237_v53 = vmul.u32.u64.high %v71_v47, %v70_v51, %v236_v52 }
  0x9b   :  { %v81_v57 = vadd.s32 1, %v240_v55 }
  0x9c   :  { %vm80_vm5 = vc.u32 %v237_v53, %v239_v54  ;;  %v79_v8 = vadd.s32 %v239_v54, %v237_v53 }
  0x9d   :  { %v82_v59 = vsel %vm80_vm5, %v81_v57, %v240_v55 }
  0x9e   :  { %v83_v60 = vadd.s32 %v82_v59, %v78_v58 }
  0xa0   :  { %v84_v61 = vadd.s32 536870912, %v83_v60 }
  0xa2   :  { %v85_v62 = vshrl.u32 %v84_v61, 30 }
  0xa4   :  { %v86_v63 = vshll.u32 %v85_v62, 30  ;;  %v109_v21 = vsub.s32 4, %v85_v62 }
  0xa6   :  { %v87_v0 = vsub.s32 %v83_v60, %v86_v63  ;;  %v110_v24 = vsel %vm25_vm7, %v109_v21, %v85_v62 }
  0xa7   :  { %v112_v26 = vsel %vm24_vm8, 0, %v110_v24 }
  0xa8   :  { %v89_v1 = vsub.s32 0, %v87_v0  ;;  %v116_v27 = vadd.s32 3, %v112_v26 }
  0xaa   :  { %v152_v2 = vmin.u32 %v89_v1, %v87_v0  ;;  %v117_v28 = vand.u32 3, %v116_v27 }
  0xac   :  { %v91_v3 = vclz %v152_v2  ;;  %vm122_vm9 = vcmp.eq.s32.totalorder %v117_v28, 2  ;;  %vm119_vm10 = vcmp.eq.s32.totalorder %v117_v28, 0  ;;  %vm118_vm11 = vcmp.lt.s32.totalorder %v117_v28, 2 }
  0xae   :  { %v153_v5 = vadd.s32 4294967294, %v91_v3 }
  0xb0   :  { %vm154_vm6 = vcmp.lt.s32.totalorder %v153_v5, 0 }
  0xb1   :  { %v94_v7 = vsel %vm154_vm6, 0, %v153_v5 }
  0xb2   :  { %v95_v9 = vsub.s32 32, %v94_v7  ;;  %v99_v10 = vsub.s32 4294967266, %v94_v7  ;;  %v96_v12 = vshll.u32 %v87_v0, %v94_v7 }
  0xb4   :  { %v97_v13 = vshrl.u32 %v79_v8, %v95_v9  ;;  %v100_v14 = vadd.s32 127, %v99_v10 }
  0xb6   :  { %v98_v15 = vor.u32 %v97_v13, %v96_v12  ;;  %v101_v16 = vshll.u32 %v100_v14, 23 }
  0xb8   :  { %v102_v17 = vor.u32 4788187, %v101_v16  ;;  %v105_v19 = vcvt.s32.f32 %v98_v15 }
  0xba   :  { %v103_v18 = vand.u32 2147483647, %v102_v17 }
  0xbc   :  { %v106_v20 = vmul.f32 %v105_v19, %v103_v18 }
  0xbe   :  { %v107_v22 = vxor.u32 2147483648, %v106_v20 }
  0xc0   :  { %v108_v23 = vsel %vm25_vm7, %v107_v22, %v106_v20 }
  0xc1   :  { %v111_v25 = vsel %vm24_vm8, %v230_v6, %v108_v23 }
  0xc2   :  { %170 = vcosq.f32 %v111_v25 }
  0xc3   :  { %172 = vsinq.f32 %v111_v25 }
  0xcc   :  { %v171_v29 = vpop.eup %170 }
  0xcd   :  { %v173_v30 = vpop.eup %172  ;;  %v123_v31 = vxor.u32 2147483648, %v171_v29 }
  0xce   :  { %v120_v32 = vxor.u32 2147483648, %v173_v30 }
  0xcf   :  { %v124_v33 = vsel %vm122_vm9, %v123_v31, %v173_v30 }
  0xd0   :  { %v121_v34 = vsel %vm119_vm10, %v171_v29, %v120_v32 }
  0xd1   :  { %v125_v11 = vsel %vm118_vm11, %v121_v34, %v124_v33 }
  0xd2   :  { %v126_v35 = vsel %vm115_vm12, nan, %v125_v11 }
  0xd3   :  { %v127_v36 = vmul.f32 %v126_v35, %v126_v35 }
  0xd5   :  { %v133_v38 = vmul.f32 %v131_v37, %v127_v36 }
  0xd7   :  { %v134_v39 = vadd.f32 %v133_v38, %v227_v4 }
  0xd9   :  { %136 = vst.msk [vmem:[#allocation2] sm:$0xff] %vm135_vm13, %v134_v39 }
  0xda   :  { %185 = shalt.err (!%p182_p4)
}
  0xdb   :  { %s186_s16 = scalar_lea.hbm %s266_s2, 128 }
  0xdc   :  { %p187_p5 = scmp.ne.s32.totalorder %s266_s2, %s186_s16  ;;  %p190_p6 = scmp.lt.u32.totalorder %s186_s16, %s266_s2 }
  0xde   :  { %p192_p7 = pnand %p190_p6, %p187_p5 }
  0xe0   :  { %195 = shalt.err (!%p192_p7)
}
  0xe1   :  { %146 = dma.vmem_to_hbm [thread:$0]  %s144_s1, 128, %s266_s2, [#allocation3]  }
  0xe2   :  { %196 = dma.done.wait [#allocation3], 128  }
  0xe3   :  { %197 = vsyncadd [#allocation3], 4294967168 }
  0xe4   :  { %150 = vsyncpa [#allocation3], 1 }

</bundles_post_ra>
